<compile_context>
chip_gen: v7x
topology: tpu7x:2x2x1
jax: 0.10.0
libtpu: 0.0.40
codegen_flags: <defaults>
</compile_context>

<pallas_src>
import math

import jax
import jax.numpy as jnp
from jax.experimental import pallas as pl
from jax.experimental.pallas import tpu as pltpu

_NEG_BIG = -1e9  # matches torch masked_fill_(mask == 0, -1e9)


# ----------------------------------------------------------------------------
# Helpers
# ----------------------------------------------------------------------------
def _pick_tile(n, target, min_tile):
    """Largest halved-from-target divisor of n that is <= target (>= min_tile),
    otherwise the full dimension.  Keeps blocks (8,128)-legal."""
    if n <= target:
        return n
    t = target
    while t >= min_tile:
        if n % t == 0:
            return t
        t //= 2
    # TODO(synk): pad non-divisible large dims to a tile multiple (mask the tail)
    # instead of falling back to a full-extent block.
    return n


def _vmem_budget_bytes():
    """Generation-aware VMEM budget: physical capacity minus headroom for Mosaic
    internal scratch.  v5e/v6e (128 MiB) -> ~112 MiB, v7x (64 MiB) -> ~48 MiB."""
    try:
        cap = int(pltpu.get_tpu_info().vmem_capacity_bytes)
    except Exception:
        cap = 64 * 1024 * 1024  # safe everywhere if the query is unavailable
    return max(32 * 1024 * 1024, cap - 16 * 1024 * 1024)


def _vmem_limit_bytes(est, budget):
    return int(min(budget, max(2 * est, 16 * 1024 * 1024)))


# ----------------------------------------------------------------------------
# Tiled linear kernel:  y = x @ W^T + b   (W^T passed pre-transposed)
# ----------------------------------------------------------------------------
def _linear_kernel(x_ref, wt_ref, b_ref, o_ref, acc_ref):
    @pl.when(pl.program_id(2) == 0)
    def _init():
        acc_ref[...] = jnp.zeros_like(acc_ref)

    acc_ref[...] += jnp.dot(x_ref[...], wt_ref[...],
                            preferred_element_type=jnp.float32)

    @pl.when(pl.program_id(2) == pl.num_programs(2) - 1)
    def _store():
        o_ref[...] = (acc_ref[...] + b_ref[...].astype(jnp.float32)).astype(o_ref.dtype)


def pallas_linear(x2d, w_t, b, budget):
    """x2d: (M, K), w_t: (K, N), b: (N,) -> (M, N)."""
    M, K = x2d.shape
    N = w_t.shape[1]
    itemsize = jnp.dtype(x2d.dtype).itemsize

    def footprint(tm, tn, tk):
        return (2 * itemsize * (tm * tk + tk * tn + tn)
                + 2 * itemsize * tm * tn + 4 * tm * tn)

    tm_t, tn_t, tk_t = 512, 512, 512  # tk raised 256 -> 512: fewer acc revisits
    while True:
        tm = _pick_tile(M, tm_t, 8)
        tn = _pick_tile(N, tn_t, 128)
        tk = _pick_tile(K, tk_t, 128)
        if footprint(tm, tn, tk) <= 0.6 * budget:
            break
        if tm_t > 64:
            tm_t //= 2
        elif tn_t > 128:
            tn_t //= 2
        elif tk_t > 128:
            tk_t //= 2
        else:
            break

    grid = (M // tm, N // tn, K // tk)
    cost = pl.CostEstimate(flops=int(2 * M * N * K), transcendentals=0,
                           bytes_accessed=int(itemsize * (M * K + K * N + M * N + N)))

    return pl.pallas_call(
        _linear_kernel,
        out_shape=jax.ShapeDtypeStruct((M, N), x2d.dtype),
        grid=grid,
        in_specs=[
            pl.BlockSpec((tm, tk), lambda i, j, k: (i, k)),
            pl.BlockSpec((tk, tn), lambda i, j, k: (k, j)),
            pl.BlockSpec((1, tn), lambda i, j, k: (0, j)),
        ],
        out_specs=pl.BlockSpec((tm, tn), lambda i, j, k: (i, j)),
        scratch_shapes=[pltpu.VMEM((tm, tn), jnp.float32)],
        compiler_params=pltpu.CompilerParams(
            dimension_semantics=("parallel", "parallel", "arbitrary"),
            vmem_limit_bytes=_vmem_limit_bytes(footprint(tm, tn, tk), budget)),
        cost_estimate=cost,
    )(x2d, w_t, b.reshape(1, N))


# ----------------------------------------------------------------------------
# Fused QKV projection: D-wide, 3-folded blocks; x tile read once for Q/K/V
# ----------------------------------------------------------------------------
def _fused_qkv_kernel(x_ref, w_ref, b_ref, o_ref, acc_ref):
    @pl.when(pl.program_id(1) == 0)
    def _init():
        acc_ref[...] = jnp.zeros_like(acc_ref)

    x = x_ref[...]
    for s in range(3):  # Q / K / V reuse the resident x tile
        acc_ref[s] += jnp.dot(x, w_ref[s], preferred_element_type=jnp.float32)

    @pl.when(pl.program_id(1) == pl.num_programs(1) - 1)
    def _store():
        o_ref[...] = (acc_ref[...] + b_ref[...].astype(jnp.float32)).astype(o_ref.dtype)


def pallas_fused_qkv(x2d, w_stacked, b_stacked, budget):
    """x2d: (M, K), w_stacked: (3, K, D) (= stacked [scaled-Wq^T, Wk^T, Wv^T]),
    b_stacked: (3, 1, D).  Returns (3, M, D), or None if D-wide 3-folded blocks
    do not fit the VMEM budget (caller falls back to separate projections)."""
    M, K = x2d.shape
    D = w_stacked.shape[2]
    itemsize = jnp.dtype(x2d.dtype).itemsize

    def footprint(tm, tk):
        return (2 * itemsize * (tm * tk + 3 * tk * D + 3 * D)
                + 2 * itemsize * 3 * tm * D + 4 * 3 * tm * D)

    tm_t, tk_t = 512, 512
    while True:
        tm = _pick_tile(M, tm_t, 8)
        tk = _pick_tile(K, tk_t, 128)
        if footprint(tm, tk) <= 0.6 * budget:
            break
        if tm_t > 64:
            tm_t //= 2
        elif tk_t > 128:
            tk_t //= 2
        else:
            break
    if footprint(tm, tk) > budget:
        return None

    grid = (M // tm, K // tk)
    cost = pl.CostEstimate(flops=int(2 * M * K * 3 * D), transcendentals=0,
                           bytes_accessed=int(itemsize * (M * K + 3 * K * D + 3 * M * D)))

    return pl.pallas_call(
        _fused_qkv_kernel,
        out_shape=jax.ShapeDtypeStruct((3, M, D), x2d.dtype),
        grid=grid,
        in_specs=[
            pl.BlockSpec((tm, tk), lambda i, k: (i, k)),
            pl.BlockSpec((3, tk, D), lambda i, k: (0, k, 0)),
            pl.BlockSpec((3, 1, D), lambda i, k: (0, 0, 0)),
        ],
        out_specs=pl.BlockSpec((3, tm, D), lambda i, k: (0, i, 0)),
        scratch_shapes=[pltpu.VMEM((3, tm, D), jnp.float32)],
        compiler_params=pltpu.CompilerParams(
            dimension_semantics=("parallel", "arbitrary"),
            vmem_limit_bytes=_vmem_limit_bytes(footprint(tm, tk), budget)),
        cost_estimate=cost,
    )(x2d, w_stacked, b_stacked)


# ----------------------------------------------------------------------------
# Flash-style multi-head attention kernel (online softmax, (B, S, D) layout)
# ----------------------------------------------------------------------------
def _detect_causal(mask, Sq, Sk):
    """True iff mask is a concrete (1,1,Sq,Sk)-broadcastable lower-triangular mask."""
    if mask is None:
        return False
    try:
        m = jnp.asarray(mask)
        m4 = m.reshape((1,) * (4 - m.ndim) + tuple(m.shape))
        if m4.shape != (1, 1, Sq, Sk):
            return False
        tril = jnp.tril(jnp.ones((Sq, Sk), dtype=jnp.bool_))
        return bool(jnp.array_equal(m4[0, 0] != 0, tril))
    except Exception:  # tracer / abstract value -> general masked path
        return False


def _make_attention_kernel(H, d_k, has_bias, bias_heads, causal, tq, tkv, fuse_wo):
    def kernel(*args):
        idx = 0
        if has_bias:
            bias_ref = args[idx]; idx += 1
        q_ref, k_ref, v_ref = args[idx], args[idx + 1], args[idx + 2]
        idx += 3
        if fuse_wo:
            wo_ref, bo_ref = args[idx], args[idx + 1]
            idx += 2
        o_ref = args[idx]
        m_sc, l_sc, acc_sc = args[idx + 1], args[idx + 2], args[idx + 3]

        qi = pl.program_id(1)
        kv_i = pl.program_id(2)

        @pl.when(kv_i == 0)
        def _init():
            m_sc[...] = jnp.full_like(m_sc, -jnp.inf)
            l_sc[...] = jnp.zeros_like(l_sc)
            acc_sc[...] = jnp.zeros_like(acc_sc)

        def _compute_body():
            # Additive bias (0 / -1e9), built once per (tq, tkv) tile.
            if causal:
                rows = qi * tq + jax.lax.broadcasted_iota(jnp.int32, (tq, tkv), 0)
                cols = kv_i * tkv + jax.lax.broadcasted_iota(jnp.int32, (tq, tkv), 1)
                bias_shared = jnp.where(cols <= rows, 0.0, _NEG_BIG).astype(jnp.float32)
            elif has_bias and bias_heads == 1:
                bias_shared = bias_ref[0].astype(jnp.float32)
            else:
                bias_shared = None

            for h in range(H):  # static head loop; slices taken from the refs
                sl = slice(h * d_k, (h + 1) * d_k)
                q_h = q_ref[:, sl]          # (tq, d_k)  (scale folded into Wq)
                k_h = k_ref[:, sl]          # (tkv, d_k)
                v_h = v_ref[:, sl]          # (tkv, d_k)

                s = jax.lax.dot_general(q_h, k_h, (((1,), (1,)), ((), ())),
                                        preferred_element_type=jnp.float32)
                if bias_shared is not None:
                    s = s + bias_shared
                elif has_bias:
                    s = s + bias_ref[h].astype(jnp.float32)

                m_prev = m_sc[h]
                m_new = jnp.maximum(m_prev, jnp.max(s, axis=-1, keepdims=True))
                alpha = jnp.exp(m_prev - m_new)
                p = jnp.exp(s - m_new)
                l_sc[h] = alpha * l_sc[h] + jnp.sum(p, axis=-1, keepdims=True)
                acc_sc[h] = alpha * acc_sc[h] + jnp.dot(
                    p.astype(v_h.dtype), v_h, preferred_element_type=jnp.float32)
                m_sc[h] = m_new

        if causal:
            # Skip KV tiles that are entirely above the diagonal.
            pl.when(kv_i * tkv <= qi * tq + (tq - 1))(_compute_body)
        else:
            _compute_body()

        @pl.when(kv_i == pl.num_programs(2) - 1)
        def _finalize():
            pieces = []
            for h in range(H):
                inv_l = pl.reciprocal(l_sc[h], approx=True)  # EUP slot
                pieces.append(acc_sc[h] * inv_l)
            attn = jnp.concatenate(pieces, axis=-1)          # (tq, D), lane-dense
            if fuse_wo:
                out = jnp.dot(attn.astype(wo_ref.dtype), wo_ref[...],
                              preferred_element_type=jnp.float32)
                out = out + bo_ref[...].astype(jnp.float32)
                o_ref[...] = out.astype(o_ref.dtype)
            else:
                o_ref[...] = attn.astype(o_ref.dtype)

    return kernel


def _mha_attention(make_specs, B, Sq, Sk, D, heads, dtype, mask, wo_t, bo, budget):
    H = heads
    d_k = D // H
    itemsize = jnp.dtype(dtype).itemsize

    causal = _detect_causal(mask, Sq, Sk)
    has_bias = (mask is not None) and (not causal)

    def footprint(tq, tkv, with_wo):
        f = 2 * itemsize * tq * D          # Q blocks (double-buffered)
        f += 2 * itemsize * tq * D         # O blocks
        f += 2 * itemsize * tkv * D * 2    # K and V blocks
        f += 4 * tq * (D + 2 * H)          # f32 acc + m + l scratch
        f += 12 * tq * tkv                 # per-head score/prob intermediates
        if has_bias:
            f += 2 * 2 * tq * tkv          # bf16 bias tiles
        if with_wo:
            f += 2 * itemsize * (D * D + D)
        return f

    # Raise tq/tkv targets to cut K/V re-streaming; shrink to fit the budget.
    tq_t, tkv_t = 512, 512
    while True:
        tq = _pick_tile(Sq, tq_t, 8)
        tkv = _pick_tile(Sk, tkv_t, 128)
        if footprint(tq, tkv, False) <= 0.6 * budget:
            break
        if tkv_t > 128:
            tkv_t //= 2
        elif tq_t > 128:
            tq_t //= 2
        else:
            break

    fuse_wo = (wo_t is not None) and (footprint(tq, tkv, True) <= 0.7 * budget)

    call_inputs, in_specs = make_specs(tq, tkv)
    call_inputs = list(call_inputs)
    in_specs = list(in_specs)
    mask_heads = 1

    if has_bias:
        m = jnp.asarray(mask)
        assert m.ndim <= 4, "mask rank must be <= 4"
        m4 = m.reshape((1,) * (4 - m.ndim) + tuple(m.shape))
        mb, mh, mq, mk = m4.shape
        assert mb in (1, B) and mh in (1, H) and mq in (1, Sq) and mk in (1, Sk), \
            "mask must be broadcastable to (B, heads, Sq, Sk)"
        mask_heads = mh
        # Additive bias (0 / -1e9), bf16, never broadcast over batch/heads in HBM.
        # TODO(synk): fully-masked rows give softmax(s) rather than torch's uniform
        # distribution (both degenerate); all partially-masked rows match exactly.
        bias_arr = jnp.where(m4 != 0, 0.0, _NEG_BIG).astype(jnp.bfloat16)
        qb = tq if mq == Sq else 1
        kb = tkv if mk == Sk else 1

        def bias_index(b, qi, ki, _mb=mb, _mq=mq, _mk=mk):
            return (b if _mb != 1 else 0, 0,
                    qi if _mq != 1 else 0, ki if _mk != 1 else 0)

        in_specs = [pl.BlockSpec((None, mh, qb, kb), bias_index)] + in_specs
        call_inputs = [bias_arr] + call_inputs

    if fuse_wo:
        in_specs += [pl.BlockSpec((D, D), lambda b, qi, ki: (0, 0)),
                     pl.BlockSpec((1, D), lambda b, qi, ki: (0, 0))]
        call_inputs += [wo_t, bo.reshape(1, D)]

    kernel = _make_attention_kernel(H, d_k, has_bias, mask_heads, causal,
                                    tq, tkv, fuse_wo)

    grid = (B, Sq // tq, Sk // tkv)
    out_spec = pl.BlockSpec((None, tq, D), lambda b, qi, ki: (b, qi, 0))
    out_shape = jax.ShapeDtypeStruct((B, Sq, D), dtype)

    est_vmem = footprint(tq, tkv, fuse_wo)
    flops = 4 * B * H * Sq * Sk * d_k + (2 * B * Sq * D * D if fuse_wo else 0)
    bytes_accessed = itemsize * (2 * B * Sq * D + 2 * B * Sk * D * max(1, Sq // tq))
    cost = pl.CostEstimate(flops=int(flops), transcendentals=int(B * H * Sq * Sk),
                           bytes_accessed=int(bytes_accessed))

    out = pl.pallas_call(
        kernel,
        out_shape=out_shape,
        grid=grid,
        in_specs=in_specs,
        out_specs=out_spec,
        scratch_shapes=[
            pltpu.VMEM((H, tq, 1), jnp.float32),    # running max
            pltpu.VMEM((H, tq, 1), jnp.float32),    # running sum
            pltpu.VMEM((H, tq, d_k), jnp.float32),  # output accumulator
        ],
        compiler_params=pltpu.CompilerParams(
            dimension_semantics=("parallel", "parallel", "arbitrary"),
            vmem_limit_bytes=_vmem_limit_bytes(est_vmem, budget)),
        cost_estimate=cost,
    )(*call_inputs)
    return out, fuse_wo


def pallas_mha_attention_fused(qkv, heads, mask, wo_t, bo, budget):
    """qkv: (3, B, S, D) stacked Q'/K'/V' activations (self-attention path)."""
    _, B, S, D = qkv.shape

    def make_specs(tq, tkv):
        q_spec = pl.BlockSpec((None, None, tq, D), lambda b, qi, ki: (0, b, qi, 0))
        k_spec = pl.BlockSpec((None, None, tkv, D), lambda b, qi, ki: (1, b, ki, 0))
        v_spec = pl.BlockSpec((None, None, tkv, D), lambda b, qi, ki: (2, b, ki, 0))
        return [qkv, qkv, qkv], [q_spec, k_spec, v_spec]

    return _mha_attention(make_specs, B, S, S, D, heads, qkv.dtype, mask,
                          wo_t, bo, budget)


def pallas_mha_attention(q_act, k_act, v_act, heads, mask, wo_t, bo, budget):
    """Separate (B, Sq, D) / (B, Sk, D) activations (cross-attention path)."""
    B, Sq, D = q_act.shape
    Sk = k_act.shape[1]

    def make_specs(tq, tkv):
        q_spec = pl.BlockSpec((None, tq, D), lambda b, qi, ki: (b, qi, 0))
        k_spec = pl.BlockSpec((None, tkv, D), lambda b, qi, ki: (b, ki, 0))
        v_spec = pl.BlockSpec((None, tkv, D), lambda b, qi, ki: (b, ki, 0))
        return [q_act, k_act, v_act], [q_spec, k_spec, v_spec]

    return _mha_attention(make_specs, B, Sq, Sk, D, heads, q_act.dtype, mask,
                          wo_t, bo, budget)


# ----------------------------------------------------------------------------
# Module wrapper
# ----------------------------------------------------------------------------
class ScaledMultiHeadAttentionBlockPallas:
    def __init__(self, d_model: int, heads: int, dropout: float, key):
        assert d_model % heads == 0, "d_model should be divisible by heads"
        self.d_model = d_model
        self.heads = heads
        self.d_k = d_model // heads
        self.dropout_p = dropout  # nn.Dropout in eval() -> identity

        keys = jax.random.split(key, 8)
        bound = 1.0 / math.sqrt(d_model)

        def init_linear(kw, kb):
            # PyTorch nn.Linear default init; weight stored transposed (y = x @ W^T + b)
            w = jax.random.uniform(kw, (d_model, d_model), jnp.float32, -bound, bound)
            b = jax.random.uniform(kb, (d_model,), jnp.float32, -bound, bound)
            return w.T, b

        self.wq_t, self.bq = init_linear(keys[0], keys[1])
        self.wk_t, self.bk = init_linear(keys[2], keys[3])
        self.wv_t, self.bv = init_linear(keys[4], keys[5])
        self.wo_t, self.bo = init_linear(keys[6], keys[7])

        # Fold 1/sqrt(d_k) into the Q projection (weights AND bias).
        scale = 1.0 / math.sqrt(self.d_k)
        self._wq_t_s = self.wq_t * scale
        self._bq_s = self.bq * scale

        # Fused QKV parameters (self-attention path): slot 0 already carries the scale.
        self.wqkv_stacked = jnp.stack([self._wq_t_s, self.wk_t, self.wv_t], axis=0)
        self.bqkv_stacked = jnp.stack([self._bq_s, self.bk, self.bv], axis=0
                                      ).reshape(3, 1, d_model)

    def _separate_projections(self, q, k, v, budget):
        B, Sq, D = q.shape
        Sk = k.shape[1]
        q_act = pallas_linear(q.reshape(B * Sq, D), self._wq_t_s, self._bq_s,
                              budget).reshape(B, Sq, D)
        k_act = pallas_linear(k.reshape(B * Sk, D), self.wk_t, self.bk,
                              budget).reshape(B, Sk, D)
        v_act = pallas_linear(v.reshape(B * Sk, D), self.wv_t, self.bv,
                              budget).reshape(B, Sk, D)
        return q_act, k_act, v_act

    def __call__(self, q, k, v, mask=None):
        B, Sq, D = q.shape
        budget = _vmem_budget_bytes()

        if (q is k) and (k is v):
            # Self-attention: one fused projection, x read from HBM once.
            qkv = pallas_fused_qkv(q.reshape(B * Sq, D),
                                   self.wqkv_stacked, self.bqkv_stacked, budget)
            if qkv is not None:
                qkv = qkv.reshape(3, B, Sq, D)  # free (leading-dim reshape)
                attn, wo_fused = pallas_mha_attention_fused(
                    qkv, self.heads, mask, self.wo_t, self.bo, budget)
            else:
                q_act, k_act, v_act = self._separate_projections(q, k, v, budget)
                attn, wo_fused = pallas_mha_attention(
                    q_act, k_act, v_act, self.heads, mask, self.wo_t, self.bo, budget)
        else:
            q_act, k_act, v_act = self._separate_projections(q, k, v, budget)
            attn, wo_fused = pallas_mha_attention(
                q_act, k_act, v_act, self.heads, mask, self.wo_t, self.bo, budget)

        # TODO(synk): self.attention_scores (full pre-softmax score matrix) is not
        # materialized -- incompatible with flash-style KV tiling; forward output
        # semantics are unchanged.
        if wo_fused:
            return attn
        out = pallas_linear(attn.reshape(B * Sq, D), self.wo_t, self.bo, budget)
        return out.reshape(B, Sq, D)


# ----------------------------------------------------------------------------
# Pure-JAX reference (same math as the torch module) for correctness check
# ----------------------------------------------------------------------------
def reference_forward(block, q, k, v, mask=None):
    B, Sq, D = q.shape
    Sk = k.shape[1]
    H, d_k = block.heads, block.d_k
    qd = q.reshape(B * Sq, D) @ block.wq_t + block.bq
    kd = k.reshape(B * Sk, D) @ block.wk_t + block.bk
    vd = v.reshape(B * Sk, D) @ block.wv_t + block.bv
    qh = qd.reshape(B, Sq, H, d_k).transpose(0, 2, 1, 3)
    kh = kd.reshape(B, Sk, H, d_k).transpose(0, 2, 1, 3)
    vh = vd.reshape(B, Sk, H, d_k).transpose(0, 2, 1, 3)
    s = jnp.einsum("bhqd,bhkd->bhqk", qh, kh) / math.sqrt(d_k)
    if mask is not None:
        s = jnp.where(jnp.broadcast_to(mask, s.shape) == 0, -1e9, s)
    p = jax.nn.softmax(s, axis=-1)
    o = jnp.einsum("bhqk,bhkd->bhqd", p, vh)
    o = o.transpose(0, 2, 1, 3).reshape(B, Sq, D)
    return (o.reshape(B * Sq, D) @ block.wo_t + block.bo).reshape(B, Sq, D)


if __name__ == "__main__":
    B, S, d_model, heads = 2, 8, 32, 4
    dropout = 0.1  # identity at inference

    key = jax.random.PRNGKey(0)
    k_param, k_x, k_k, k_v = jax.random.split(key, 4)

    block = ScaledMultiHeadAttentionBlockPallas(d_model, heads, dropout, k_param)
    x = jax.random.normal(k_x, (B, S, d_model), jnp.float32)

    tol = dict(atol=5e-3, rtol=5e-3)

    # 1) Self-attention (fused QKV + fused W_o path), no mask.
    out1 = jax.block_until_ready(block(x, x, x, mask=None))
    ref1 = reference_forward(block, x, x, x, None)
    assert out1.shape == (B, S, d_model)
    assert jnp.allclose(out1, ref1, **tol), "self-attention mismatch vs reference"

    # 2) Self-attention with a causal mask -> in-kernel iota causal fast path.
    causal = jnp.tril(jnp.ones((S, S), jnp.int32)).reshape(1, 1, S, S)
    out2 = jax.block_until_ready(block(x, x, x, mask=causal))
    ref2 = reference_forward(block, x, x, x, causal)
    assert jnp.allclose(out2, ref2, **tol), "causal attention mismatch vs reference"

    # 3) Self-attention with a padding mask -> streamed additive-bias path.
    pad = jnp.ones((B, 1, 1, S), jnp.int32).at[:, :, :, S - 2:].set(0)
    out3 = jax.block_until_ready(block(x, x, x, mask=pad))
    ref3 = reference_forward(block, x, x, x, pad)
    assert jnp.allclose(out3, ref3, **tol), "padded attention mismatch vs reference"

    # 4) Cross-attention (separate projections, different KV length), no mask.
    Skv = 16
    kx = jax.random.normal(k_k, (B, Skv, d_model), jnp.float32)
    vx = jax.random.normal(k_v, (B, Skv, d_model), jnp.float32)
    out4 = jax.block_until_ready(block(x, kx, vx, mask=None))
    ref4 = reference_forward(block, x, kx, vx, None)
    assert jnp.allclose(out4, ref4, **tol), "cross-attention mismatch vs reference"

    print("KERNEL_OK")
</pallas_src>

<mosaic_0001>
module attributes {stable_mosaic.version = 11 : i64} {
  func.func @_fused_qkv_kernel(%arg0: i32, %arg1: i32, %arg2: memref<16x32xf32, #tpu.memory_space<vmem>>, %arg3: memref<3x32x32xf32, #tpu.memory_space<vmem>>, %arg4: memref<3x1x32xf32, #tpu.memory_space<vmem>>, %arg5: memref<3x16x32xf32, #tpu.memory_space<vmem>>, %arg6: memref<3x16x32xf32, #tpu.memory_space<vmem>>) attributes {dimension_semantics = [#tpu.dimension_semantics<parallel>, #tpu.dimension_semantics<arbitrary>], iteration_bounds = array<i64: 1, 1>, scalar_prefetch = 0 : i64, scratch_operands = 1 : i64, tpu.core_type = #tpu.core_type<tc>, window_params = [{transform_indices = @transform_0, window_bounds = array<i64: 16, 32>}, {transform_indices = @transform_1, window_bounds = array<i64: 3, 32, 32>}, {pipeline_mode = #tpu.pipeline_mode<synchronous>, transform_indices = @transform_2, window_bounds = array<i64: 3, 1, 32>}, {transform_indices = @transform_3, window_bounds = array<i64: 3, 16, 32>}]} {
    %c0_i32 = arith.constant 0 : i32
    %0 = arith.cmpi eq, %arg1, %c0_i32 : i32
    %1 = arith.extui %0 : i1 to i32
    %c0_i32_0 = arith.constant 0 : i32
    %2 = arith.cmpi ne, %1, %c0_i32_0 : i32
    scf.if %2 {
      %cst_31 = arith.constant 0.000000e+00 : f32
      %34 = vector.broadcast %cst_31 : f32 to vector<3x16x32xf32>
      %c0_32 = arith.constant 0 : index
      %c0_33 = arith.constant 0 : index
      %c0_34 = arith.constant 0 : index
      %35 = vector.load %arg6[%c0_32, %c0_33, %c0_34] : memref<3x16x32xf32, #tpu.memory_space<vmem>>, vector<3x16x32xf32>
      tpu.vector_store %arg6[%c0_32, %c0_33, %c0_34], %34 {strides = array<i32>} : memref<3x16x32xf32, #tpu.memory_space<vmem>>, vector<3x16x32xf32>,
    } else {
    }
    %c0 = arith.constant 0 : index
    %c0_1 = arith.constant 0 : index
    %3 = vector.load %arg2[%c0, %c0_1] : memref<16x32xf32, #tpu.memory_space<vmem>>, vector<16x32xf32>
    %c0_2 = arith.constant 0 : index
    %c0_3 = arith.constant 0 : index
    %c0_4 = arith.constant 0 : index
    %4 = vector.load %arg6[%c0_2, %c0_3, %c0_4] : memref<3x16x32xf32, #tpu.memory_space<vmem>>, vector<1x16x32xf32>
    %5 = vector.shape_cast %4 : vector<1x16x32xf32> to vector<16x32xf32>
    %c0_5 = arith.constant 0 : index
    %c0_6 = arith.constant 0 : index
    %c0_7 = arith.constant 0 : index
    %6 = vector.load %arg3[%c0_5, %c0_6, %c0_7] : memref<3x32x32xf32, #tpu.memory_space<vmem>>, vector<1x32x32xf32>
    %7 = vector.shape_cast %6 : vector<1x32x32xf32> to vector<32x32xf32>
    %cst = arith.constant dense<0.000000e+00> : vector<16x32xf32>
    %8 = tpu.matmul %3, %7, %cst {dimension_numbers = #tpu.dot_dimension_numbers<[1], [0], [0], [1], [0, 0, 1, 1], [], []>} : vector<16x32xf32>, vector<32x32xf32>, vector<16x32xf32> -> vector<16x32xf32>
    %9 = arith.addf %5, %8 : vector<16x32xf32>
    %c0_8 = arith.constant 0 : index
    %c0_9 = arith.constant 0 : index
    %c0_10 = arith.constant 0 : index
    %10 = vector.load %arg6[%c0_8, %c0_9, %c0_10] : memref<3x16x32xf32, #tpu.memory_space<vmem>>, vector<1x16x32xf32>
    %11 = vector.shape_cast %10 : vector<1x16x32xf32> to vector<16x32xf32>
    %12 = vector.shape_cast %9 : vector<16x32xf32> to vector<1x16x32xf32>
    tpu.vector_store %arg6[%c0_8, %c0_9, %c0_10], %12 {strides = array<i32>} : memref<3x16x32xf32, #tpu.memory_space<vmem>>, vector<1x16x32xf32>,
    %c1 = arith.constant 1 : index
    %c0_11 = arith.constant 0 : index
    %c0_12 = arith.constant 0 : index
    %13 = vector.load %arg6[%c1, %c0_11, %c0_12] : memref<3x16x32xf32, #tpu.memory_space<vmem>>, vector<1x16x32xf32>
    %14 = vector.shape_cast %13 : vector<1x16x32xf32> to vector<16x32xf32>
    %c1_13 = arith.constant 1 : index
    %c0_14 = arith.constant 0 : index
    %c0_15 = arith.constant 0 : index
    %15 = vector.load %arg3[%c1_13, %c0_14, %c0_15] : memref<3x32x32xf32, #tpu.memory_space<vmem>>, vector<1x32x32xf32>
    %16 = vector.shape_cast %15 : vector<1x32x32xf32> to vector<32x32xf32>
    %cst_16 = arith.constant dense<0.000000e+00> : vector<16x32xf32>
    %17 = tpu.matmul %3, %16, %cst_16 {dimension_numbers = #tpu.dot_dimension_numbers<[1], [0], [0], [1], [0, 0, 1, 1], [], []>} : vector<16x32xf32>, vector<32x32xf32>, vector<16x32xf32> -> vector<16x32xf32>
    %18 = arith.addf %14, %17 : vector<16x32xf32>
    %c1_17 = arith.constant 1 : index
    %c0_18 = arith.constant 0 : index
    %c0_19 = arith.constant 0 : index
    %19 = vector.load %arg6[%c1_17, %c0_18, %c0_19] : memref<3x16x32xf32, #tpu.memory_space<vmem>>, vector<1x16x32xf32>
    %20 = vector.shape_cast %19 : vector<1x16x32xf32> to vector<16x32xf32>
    %21 = vector.shape_cast %18 : vector<16x32xf32> to vector<1x16x32xf32>
    tpu.vector_store %arg6[%c1_17, %c0_18, %c0_19], %21 {strides = array<i32>} : memref<3x16x32xf32, #tpu.memory_space<vmem>>, vector<1x16x32xf32>,
    %c2 = arith.constant 2 : index
    %c0_20 = arith.constant 0 : index
    %c0_21 = arith.constant 0 : index
    %22 = vector.load %arg6[%c2, %c0_20, %c0_21] : memref<3x16x32xf32, #tpu.memory_space<vmem>>, vector<1x16x32xf32>
    %23 = vector.shape_cast %22 : vector<1x16x32xf32> to vector<16x32xf32>
    %c2_22 = arith.constant 2 : index
    %c0_23 = arith.constant 0 : index
    %c0_24 = arith.constant 0 : index
    %24 = vector.load %arg3[%c2_22, %c0_23, %c0_24] : memref<3x32x32xf32, #tpu.memory_space<vmem>>, vector<1x32x32xf32>
    %25 = vector.shape_cast %24 : vector<1x32x32xf32> to vector<32x32xf32>
    %cst_25 = arith.constant dense<0.000000e+00> : vector<16x32xf32>
    %26 = tpu.matmul %3, %25, %cst_25 {dimension_numbers = #tpu.dot_dimension_numbers<[1], [0], [0], [1], [0, 0, 1, 1], [], []>} : vector<16x32xf32>, vector<32x32xf32>, vector<16x32xf32> -> vector<16x32xf32>
    %27 = arith.addf %23, %26 : vector<16x32xf32>
    %c2_26 = arith.constant 2 : index
    %c0_27 = arith.constant 0 : index
    %c0_28 = arith.constant 0 : index
    %28 = vector.load %arg6[%c2_26, %c0_27, %c0_28] : memref<3x16x32xf32, #tpu.memory_space<vmem>>, vector<1x16x32xf32>
    %29 = vector.shape_cast %28 : vector<1x16x32xf32> to vector<16x32xf32>
    %30 = vector.shape_cast %27 : vector<16x32xf32> to vector<1x16x32xf32>
    tpu.vector_store %arg6[%c2_26, %c0_27, %c0_28], %30 {strides = array<i32>} : memref<3x16x32xf32, #tpu.memory_space<vmem>>, vector<1x16x32xf32>,
    %c0_i32_29 = arith.constant 0 : i32
    %31 = arith.cmpi eq, %arg1, %c0_i32_29 : i32
    %32 = arith.extui %31 : i1 to i32
    %c0_i32_30 = arith.constant 0 : i32
    %33 = arith.cmpi ne, %32, %c0_i32_30 : i32
    scf.if %33 {
      %c0_31 = arith.constant 0 : index
      %c0_32 = arith.constant 0 : index
      %c0_33 = arith.constant 0 : index
      %34 = vector.load %arg6[%c0_31, %c0_32, %c0_33] : memref<3x16x32xf32, #tpu.memory_space<vmem>>, vector<3x16x32xf32>
      %c0_34 = arith.constant 0 : index
      %c0_35 = arith.constant 0 : index
      %c0_36 = arith.constant 0 : index
      %35 = vector.load %arg4[%c0_34, %c0_35, %c0_36] : memref<3x1x32xf32, #tpu.memory_space<vmem>>, vector<3x1x32xf32>
      %36 = vector.broadcast %35 : vector<3x1x32xf32> to vector<3x16x32xf32>
      %37 = arith.addf %34, %36 : vector<3x16x32xf32>
      %c0_37 = arith.constant 0 : index
      %c0_38 = arith.constant 0 : index
      %c0_39 = arith.constant 0 : index
      %38 = vector.load %arg5[%c0_37, %c0_38, %c0_39] : memref<3x16x32xf32, #tpu.memory_space<vmem>>, vector<3x16x32xf32>
      tpu.vector_store %arg5[%c0_37, %c0_38, %c0_39], %37 {strides = array<i32>} : memref<3x16x32xf32, #tpu.memory_space<vmem>>, vector<3x16x32xf32>,
    } else {
    }
    return
  }
  func.func @transform_0(%arg0: i32, %arg1: i32) -> (i32, i32) {
    %c0_i32 = arith.constant 0 : i32
    return %arg0, %arg1 : i32, i32
  }
  func.func @transform_1(%arg0: i32, %arg1: i32) -> (i32, i32, i32) {
    %c0_i32 = arith.constant 0 : i32
    %c0_i32_0 = arith.constant 0 : i32
    %c0_i32_1 = arith.constant 0 : i32
    return %c0_i32, %arg1, %c0_i32_0 : i32, i32, i32
  }
  func.func @transform_2(%arg0: i32, %arg1: i32) -> (i32, i32, i32) {
    %c0_i32 = arith.constant 0 : i32
    %c0_i32_0 = arith.constant 0 : i32
    %c0_i32_1 = arith.constant 0 : i32
    %c0_i32_2 = arith.constant 0 : i32
    return %c0_i32, %c0_i32_0, %c0_i32_1 : i32, i32, i32
  }
  func.func @transform_3(%arg0: i32, %arg1: i32) -> (i32, i32, i32) {
    %c0_i32 = arith.constant 0 : i32
    %c0_i32_0 = arith.constant 0 : i32
    %c0_i32_1 = arith.constant 0 : i32
    return %c0_i32, %arg0, %c0_i32_0 : i32, i32, i32
  }
}

</mosaic_0001>

<bundles_post_ra>
// kernel: tpu_custom_call.1
= control target key start
LH: loop header
LB: loop body
LE: loop exit
PB: predicated region body
PF: predicated region fallthrough
CT: control target
= control target key end

     0   :  { %8 = vsyncpa [#allocation4], 0  ;;  %s648_s0 = inlined_call_operand.hbm [shape: f32[16,32], index: 0, kind: input, shape index: {}]   ;;  %s649_s1 = inlined_call_operand.hbm [shape: f32[3,32,32], index: 1, kind: input, shape index: {}]   ;;  %s650_s2 = inlined_call_operand.vmem [shape: f32[3,1,32], index: 2, kind: input, shape index: {}]   ;;  %s651_s3 = inlined_call_operand.hbm [shape: f32[3,16,32], index: 3, kind: output, shape index: {}]  }
   0x1   :  { %9 = vsyncpa [#allocation7], 0 }
   0x2   :  { %10 = vsyncpa [#allocation5], 0  ;;  %s544_s12 = smov [#allocation3]   ;;  %s472_s16 = scalar_lea.hbm %s648_s0, 256 }
   0x3   :  { %s16_s13 = sshll.u32 %s544_s12, 4  ;;  %p473_p0 = scmp.ne.s32.totalorder %s648_s0, %s472_s16  ;;  %s17_s13 = int_to_ptr.vmem [resolvable:$true] %s16_s13 }
   0x4   :  { %p476_p1 = scmp.lt.u32.totalorder %s472_s16, %s648_s0 }
   0x6   :  { %p478_p2 = pnand %p476_p1, %p473_p0 }
   0x8   :  { %481 = shalt.err (!%p478_p2)
}
   0x9   :  { %s482_s21 = scalar_lea.vmem %s17_s13, 256  ;;  %p487_p4 = scmp.lt.s32.totalorder %s17_s13, %s17_s13 }
   0xa   :  { %p483_p3 = scmp.ne.s32.totalorder %s17_s13, %s482_s21  ;;  %p488_p5 = scmp.lt.s32.totalorder %s482_s21, %s482_s21 }
   0xc   :  { %p489_p6 = por %p488_p5, %p487_p4 }
   0xe   :  { %p490_p7 = pnand %p489_p6, %p483_p3 }
  0x10   :  { %493 = shalt.err (!%p490_p7)
}
  0x11   :  { %s545_s22 = smov 128   ;;  %s546_s23 = smov 8  }
  0x12   :  { %22 = dma.hbm_to_vmem [thread:$0]  %s648_s0, 256, %s17_s13, [#allocation4], %s545_s22, %s545_s22, %s546_s23  }
  0x13   :  { %s547_s26 = smov [#allocation6]   ;;  %s494_s30 = scalar_lea.hbm %s649_s1, 1536 }
  0x14   :  { %s28_s27 = sshll.u32 %s547_s26, 4  ;;  %p495_p8 = scmp.ne.s32.totalorder %s649_s1, %s494_s30  ;;  %s29_s27 = int_to_ptr.vmem [resolvable:$true] %s28_s27 }
  0x15   :  { %p498_p9 = scmp.lt.u32.totalorder %s494_s30, %s649_s1 }
  0x17   :  { %p500_p10 = pnand %p498_p9, %p495_p8 }
  0x19   :  { %503 = shalt.err (!%p500_p10)
}
  0x1a   :  { %s504_s8 = scalar_lea.vmem %s29_s27, 1536  ;;  %p509_p12 = scmp.lt.s32.totalorder %s29_s27, %s29_s27 }
  0x1b   :  { %p505_p11 = scmp.ne.s32.totalorder %s29_s27, %s504_s8  ;;  %p510_p13 = scmp.lt.s32.totalorder %s504_s8, %s504_s8 }
  0x1d   :  { %p511_p0 = por %p510_p13, %p509_p12 }
  0x1f   :  { %p512_p1 = pnand %p511_p0, %p505_p11 }
  0x21   :  { %515 = shalt.err (!%p512_p1)
}
  0x22   :  { %34 = dma.hbm_to_vmem [thread:$0]  %s649_s1, 1536, %s29_s27, [#allocation7], %s545_s22, %s545_s22, %s546_s23  }
  0x23   :  { %538 = dma.done.wait [#allocation4], 256  }
  0x24   :  { %539 = vsyncadd [#allocation4], 4294967040 }
  0x25   :  { %540 = dma.done.wait [#allocation7], 1536  }
  0x26   :  { %541 = vsyncadd [#allocation7], 4294965760  ;;  %vm47_vm0 = vcmask 261120   ;;  %v548_v0 = vmov 0.0   ;;  %v58_v1 = vld [vmem:[#allocation6] sm:$0xff]  ;;  %v59_v2 = vld [vmem:[#allocation6 + $0x8] sm:$0xff] }
  0x27   :  { %49 = vst.msk [vmem:[#allocation2 + $0x8] sm:$0xff] %vm47_vm0, %v548_v0  ;;  %48 = vst.msk [vmem:[#allocation2] sm:$0xff] %vm47_vm0, %v548_v0  ;;  %v60_v3 = vld [vmem:[#allocation6 + $0x10] sm:$0xff]  ;;  %v442_v4 = vpack.c.bf16 %v59_v2, %v58_v1  ;;  %v61_v5 = vld [vmem:[#allocation6 + $0x18] sm:$0xff]  ;;  %s549_s15 = smov [#allocation8]  }
  0x28   :  { %50 = vst.msk [vmem:[#allocation2 + $0x10] sm:$0xff] %vm47_vm0, %v548_v0  ;;  %51 = vst.msk [vmem:[#allocation2 + $0x18] sm:$0xff] %vm47_vm0, %v548_v0  ;;  %v54_v6 = vld [vmem:[#allocation3] sm:$0xff]  ;;  %v152_v7 = vld [vmem:[#allocation6 + $0x20] sm:$0xff]  ;;  %v446_v8 = vpack.c.bf16 %v61_v5, %v60_v3  ;;  %s369_s16 = sshll.u32 %s549_s15, 4  ;;  %s370_s16 = int_to_ptr.vmem [resolvable:$true] %s369_s16 }
  0x29   :  { %52 = vst.msk [vmem:[#allocation2 + $0x20] sm:$0xff] %vm47_vm0, %v548_v0  ;;  %53 = vst.msk [vmem:[#allocation2 + $0x28] sm:$0xff] %vm47_vm0, %v548_v0  ;;  %417 = vmatprep.mubr.msk.f32.mxu0 %vm47_vm0, %v54_v6  ;;  %v153_v9 = vld [vmem:[#allocation6 + $0x28] sm:$0xff]  ;;  %v239_v10 = vld [vmem:[#allocation6 + $0x40] sm:$0xff]  ;;  %428 = vmatprep.mubr.msk.f32.mxu1 %vm47_vm0, %v54_v6  ;;  %s516_s17 = scalar_lea.vmem %s370_s16, 768  ;;  %p521_p3 = scmp.lt.s32.totalorder %s370_s16, %s370_s16 }
  0x2a   :  { %443 = vmatprep.subr.bf16.mxu0 %v442_v4  ;;  %v450_v11 = vpack.c.bf16 %v153_v9, %v152_v7  ;;  %v240_v12 = vld [vmem:[#allocation6 + $0x48] sm:$0xff]  ;;  %v154_v13 = vld [vmem:[#allocation6 + $0x30] sm:$0xff]  ;;  %v155_v14 = vld [vmem:[#allocation6 + $0x38] sm:$0xff]  ;;  %p517_p2 = scmp.ne.s32.totalorder %s370_s16, %s516_s17  ;;  %p522_p4 = scmp.lt.s32.totalorder %s516_s17, %s516_s17 }
  0x2b   :  { %445 = vmatpush3.bf16.msra.mxu0 %v442_v4  ;;  %v454_v15 = vpack.c.bf16 %v155_v14, %v154_v13  ;;  %v458_v16 = vpack.c.bf16 %v240_v12, %v239_v10  ;;  %v241_v17 = vld [vmem:[#allocation6 + $0x50] sm:$0xff]  ;;  %v242_v18 = vld [vmem:[#allocation6 + $0x58] sm:$0xff]  ;;  %v388_v36 = vld [vmem:[%s650_s2] ss:$0 sm:$0xff] }
  0x2c   :  { %447 = vmatprep.subr.bf16.mxu0 %v446_v8  ;;  %451 = vmatprep.subr.bf16.mxu1 %v450_v11  ;;  %v55_v19 = vld [vmem:[#allocation3 + $0x8] sm:$0xff]  ;;  %v462_v20 = vpack.c.bf16 %v242_v18, %v241_v17  ;;  %v389_v41 = vld [vmem:[%s650_s2 + $0x1] ss:$0 sm:$0xff]  ;;  %v390_v49 = vld [vmem:[%s650_s2 + $0x2] ss:$0 sm:$0xff]  ;;  %p523_p5 = por %p522_p4, %p521_p3 }
  0x2d   :  { %453 = vmatpush3.bf16.msra.mxu1 %v450_v11 }
  0x2e   :  { %455 = vmatprep.subr.bf16.mxu1 %v454_v15  ;;  %v57_v21 = vld [vmem:[#allocation2 + $0x8] sm:$0xff]  ;;  %v56_v22 = vld [vmem:[#allocation2] sm:$0xff]  ;;  %p524_p6 = pnand %p523_p5, %p517_p2 }
  0x2f   :  { %449 = vmatpush3.bf16.msra.mxu0 %v446_v8  ;;  %v150_v24 = vld [vmem:[#allocation2 + $0x18] sm:$0xff]  ;;  %v149_v27 = vld [vmem:[#allocation2 + $0x10] sm:$0xff] }
  0x30   :  { %459 = vmatprep.subr.bf16.mxu0 %v458_v16  ;;  %v237_v33 = vld [vmem:[#allocation2 + $0x28] sm:$0xff]  ;;  %v236_v34 = vld [vmem:[#allocation2 + $0x20] sm:$0xff] }
  0x31   :  { %457 = vmatpush3.bf16.msra.mxu1 %v454_v15 }
  0x32   :  { %418 = vmatmul.mubr.msk.f32.vlgmr.msra.gmra.mrb[0].mxu0 %vm47_vm0, %v55_v19 }
  0x33   :  { %461 = vmatpush3.bf16.msra.mxu0 %v458_v16  ;;  %439 = vmatprep.mubr.msk.f32.mxu0 %vm47_vm0, %v54_v6 }
  0x34   :  { %463 = vmatprep.subr.bf16.mxu0 %v462_v20  ;;  %429 = vmatmul.mubr.msk.f32.vlgmr.msra.gmra.mrb[0].mxu1 %vm47_vm0, %v55_v19 }
  0x37   :  { %465 = vmatpush3.bf16.msra.mxu0 %v462_v20 }
  0x3a   :  { %440 = vmatmul.mubr.msk.f32.vlgmr.msra.gmra.mrb[2].mxu0 %vm47_vm0, %v55_v19 }
 0x105   :  { %v419_v23 = vpop.f32.mrb[0].mxu0 }
 0x106   :  { %v145_v25 = vadd.f32 %v419_v23, %v57_v21  ;;  %v135_v26 = vpop.f32.mrb[1].mxu0 }
 0x107   :  { %v144_v28 = vadd.f32 %v135_v26, %v56_v22  ;;  %v430_v29 = vpop.f32.mrb[0].mxu1 }
 0x108   :  { %147 = vst.msk [vmem:[#allocation2 + $0x8] sm:$0xff] %vm47_vm0, %v145_v25  ;;  %v232_v30 = vadd.f32 %v430_v29, %v150_v24  ;;  %v222_v31 = vpop.f32.mrb[1].mxu1 }
 0x109   :  { %146 = vst.msk [vmem:[#allocation2] sm:$0xff] %vm47_vm0, %v144_v28  ;;  %v231_v32 = vadd.f32 %v222_v31, %v149_v27 }
 0x10a   :  { %234 = vst.msk [vmem:[#allocation2 + $0x18] sm:$0xff] %vm47_vm0, %v232_v30 }
 0x10b   :  { %233 = vst.msk [vmem:[#allocation2 + $0x10] sm:$0xff] %vm47_vm0, %v231_v32 }
 0x10d   :  { %v441_v35 = vpop.f32.mrb[2].mxu0 }
 0x10e   :  { %v319_v37 = vadd.f32 %v441_v35, %v237_v33  ;;  %v309_v38 = vpop.f32.mrb[3].mxu0 }
 0x10f   :  { %v318_v39 = vadd.f32 %v309_v38, %v236_v34  ;;  %v326_v40 = vld [vmem:[#allocation2 + $0x8] sm:$0xff] }
 0x110   :  { %321 = vst.msk [vmem:[#allocation2 + $0x28] sm:$0xff] %vm47_vm0, %v319_v37  ;;  %v325_v42 = vld [vmem:[#allocation2] sm:$0xff]  ;;  %v353_v43 = vadd.f32 %v388_v36, %v326_v40 }
 0x111   :  { %320 = vst.msk [vmem:[#allocation2 + $0x20] sm:$0xff] %vm47_vm0, %v318_v39  ;;  %v328_v44 = vld [vmem:[#allocation2 + $0x18] sm:$0xff]  ;;  %v352_v45 = vadd.f32 %v388_v36, %v325_v42 }
 0x112   :  { %v327_v46 = vld [vmem:[#allocation2 + $0x10] sm:$0xff]  ;;  %v355_v47 = vadd.f32 %v389_v41, %v328_v44  ;;  %359 = vst.msk [vmem:[#allocation8 + $0x8] sm:$0xff] %vm47_vm0, %v353_v43 }
 0x113   :  { %v354_v48 = vadd.f32 %v389_v41, %v327_v46  ;;  %358 = vst.msk [vmem:[#allocation8] sm:$0xff] %vm47_vm0, %v352_v45 }
 0x114   :  { %361 = vst.msk [vmem:[#allocation8 + $0x18] sm:$0xff] %vm47_vm0, %v355_v47 }
 0x115   :  { %360 = vst.msk [vmem:[#allocation8 + $0x10] sm:$0xff] %vm47_vm0, %v354_v48 }
 0x117   :  { %v330_v50 = vld [vmem:[#allocation2 + $0x28] sm:$0xff] }
 0x118   :  { %v329_v51 = vld [vmem:[#allocation2 + $0x20] sm:$0xff]  ;;  %v357_v52 = vadd.f32 %v390_v49, %v330_v50 }
 0x119   :  { %v356_v53 = vadd.f32 %v390_v49, %v329_v51 }
 0x11a   :  { %363 = vst.msk [vmem:[#allocation8 + $0x28] sm:$0xff] %vm47_vm0, %v357_v52 }
 0x11b   :  { %362 = vst.msk [vmem:[#allocation8 + $0x20] sm:$0xff] %vm47_vm0, %v356_v53 }
 0x11c   :  { %527 = shalt.err (!%p524_p6)
}
 0x11d   :  { %s528_s19 = scalar_lea.hbm %s651_s3, 768 }
 0x11e   :  { %p529_p7 = scmp.ne.s32.totalorder %s651_s3, %s528_s19  ;;  %p532_p8 = scmp.lt.u32.totalorder %s528_s19, %s651_s3 }
 0x120   :  { %p534_p9 = pnand %p532_p8, %p529_p7 }
 0x122   :  { %537 = shalt.err (!%p534_p9)
}
 0x123   :  { %375 = dma.vmem_to_hbm [thread:$0]  %s370_s16, 768, %s651_s3, [#allocation5], %s545_s22, %s545_s22, %s546_s23  }
 0x124   :  { %542 = dma.done.wait [#allocation5], 768  }
 0x125   :  { %543 = vsyncadd [#allocation5], 4294966528 }
 0x126   :  { %379 = vsyncpa [#allocation4], 1 }
 0x127   :  { %380 = vsyncpa [#allocation7], 1 }
 0x128   :  { %381 = vsyncpa [#allocation5], 1 }

</bundles_post_ra>
